<compile_context>
chip_gen: v7x
topology: tpu7x:2x2x1
jax: 0.10.0
libtpu: 0.0.40
codegen_flags: <defaults>
</compile_context>

<pallas_src>
import functools

import jax
import jax.numpy as jnp
from jax.experimental import pallas as pl
from jax.experimental.pallas import tpu as pltpu


def _cdiv(a, b):
    return -(-a // b)


def _default_num_cores():
    """2 TensorCores per device on v7x / megacore parts, else 1."""
    try:
        kind = jax.devices()[0].device_kind.lower()
    except Exception:
        return 1
    if "v7" in kind or "tpu7" in kind:
        return 2
    if "v4" in kind or "v5p" in kind:   # megacore: 'parallel' axis splits 2 TCs
        return 2
    return 1


def _pick_cpad(C):
    """Smallest divisor of 128 that is >= C (lane-dense packing); else pad to a
    multiple of 128."""
    if C > 128:
        return _cdiv(C, 128) * 128
    for d in (1, 2, 4, 8, 16, 32, 64, 128):
        if d >= C:
            return d
    return 128


def _accumulate_tile(x, is_target, a_neg, gamma, acc_ref):
    """Shared tail: focal term, masked select, per-lane accumulate (VPU only)."""
    one_minus = 1.0 - x
    g = float(gamma)
    if g.is_integer():
        focal = jax.lax.integer_pow(one_minus, int(g))      # VPU muls, EUP free
    else:
        # pow(1-x, g) == exp(g*log(1-x)); identical domain/NaN behavior, EUP ops.
        focal = jnp.exp(g * jnp.log(one_minus))
    # Exactly one lane per sample is selected; log(0)=-inf on non-target lanes
    # is discarded by the select (never multiplied into the sum).
    contrib = jnp.where(is_target, a_neg * focal * jnp.log(x), 0.0)
    tm, w = contrib.shape
    # Row-group sum: pure VPU adds into the vreg-shaped accumulator.
    acc_ref[...] += jnp.sum(contrib.reshape(tm // 8, 8, w), axis=0)


def _focal_kernel_packed(x_ref, t_ref, a_ref, lane_ref, sel_ref, o_ref, acc_ref,
                         *, gamma):
    """k>1 path: k samples packed per 128-lane row.

    x_ref   : (TM, W) f32 probabilities, W = k*C_pad
    t_ref   : (TM, k) f32 absolute packed targets (t + j*C_pad), exact in f32
    a_ref   : (1, W)  f32, -alpha tiled k times (dummy classes -> -1.0)
    lane_ref: (1, W)  f32, constant arange(W)
    sel_ref : (k, W)  f32 constant 0/1 selection matrix (sel[j,l] = [l//C_pad==j])
    o_ref   : (8, W)  f32 per-core partial-sum slab (written once)
    acc_ref : (8, W)  f32 VMEM accumulator
    """
    step = pl.program_id(1)

    @pl.when(step == 0)
    def _init():
        acc_ref[...] = jnp.zeros_like(acc_ref)

    # Segment-broadcast each sample's absolute target lane to all of its lanes
    # on the (otherwise idle) MXU, then a single compare builds the fused
    # one-hot mask.  No iota/mod/div, no select chain.
    t_lane = jnp.dot(t_ref[...], sel_ref[...],
                     preferred_element_type=jnp.float32)     # (TM, W)
    is_target = t_lane == lane_ref[...]
    _accumulate_tile(x_ref[...], is_target, a_ref[...], gamma, acc_ref)

    @pl.when(step == pl.num_programs(1) - 1)
    def _fin():
        o_ref[...] = acc_ref[...]


def _focal_kernel_unpacked(x_ref, t_ref, a_ref, lane_ref, o_ref, acc_ref,
                           *, gamma):
    """k==1 path (C_pad >= 128): one sample per row, exact int32 compare."""
    step = pl.program_id(1)

    @pl.when(step == 0)
    def _init():
        acc_ref[...] = jnp.zeros_like(acc_ref)

    is_target = lane_ref[...] == t_ref[...]    # (1,W) i32 vs (TM,1) i32 broadcast
    _accumulate_tile(x_ref[...], is_target, a_ref[...], gamma, acc_ref)

    @pl.when(step == pl.num_programs(1) - 1)
    def _fin():
        o_ref[...] = acc_ref[...]


def focal_loss(inputs, targets, alpha=None, gamma=2.0, size_average=True,
               num_cores=None, max_tile_elems=512 * 1024):
    """Focal loss matching the PyTorch module's forward.

    NOTE: like the PyTorch reference, `inputs` must already be probabilities
    (the module logs them directly; it never applies softmax).

    inputs : (N, C) float probabilities
    targets: (N,)   int class ids
    alpha  : optional per-class weights, any shape reshapable to (C,)
    """
    x = jnp.asarray(inputs, jnp.float32)
    t = jnp.asarray(targets, jnp.int32).reshape(-1)
    N, C = x.shape
    if alpha is None:
        alpha_flat = jnp.ones((C,), jnp.float32)
    else:
        alpha_flat = jnp.asarray(alpha, jnp.float32).reshape(-1)

    if num_cores is None:
        num_cores = _default_num_cores()

    # Lane packing: pad the class dim to C_pad (divisor/multiple of 128) so
    # every vreg row is 128-lane dense; k samples share one packed row.
    C_pad = _pick_cpad(C)
    k = max(1, 128 // C_pad)
    W = k * C_pad

    # Tile over packed rows: multiple of 8 sublanes, ~2 MiB per x block
    # (double-buffered x + t + elementwise temporaries stay well under the
    # 32 MiB scoped-VMEM limit on every generation, incl. v7x's 64 MiB TC).
    tile_m = max(8, min(4096, (max_tile_elems // W) // 8 * 8))
    M = _cdiv(N, k)                          # packed rows needed
    rows_per_core = _cdiv(M, num_cores)
    tile_m = min(tile_m, _cdiv(rows_per_core, 8) * 8)
    steps = _cdiv(rows_per_core, tile_m)
    M_pad = num_cores * steps * tile_m
    N_pad = M_pad * k

    # Pad rows AND dummy classes with prob 1.0:
    #   * dummy classes are never a target (targets < C) and log(1)=0 -> no -inf
    #   * padded rows have target 0, prob 1.0 -> focal = 0, log = 0 -> zero loss
    x = jnp.pad(x, ((0, N_pad - N), (0, C_pad - C)), constant_values=1.0)
    t = jnp.pad(t, (0, N_pad - N))
    alpha_pad = jnp.pad(alpha_flat, (0, C_pad - C), constant_values=1.0)

    x_pk = x.reshape(M_pad, W)                                # lane-dense view
    a_neg_row = (-jnp.tile(alpha_pad, k)).reshape(1, W)       # fold the negation

    common_x_spec = pl.BlockSpec((tile_m, W), lambda c, i: (c * steps + i, 0))
    const_row_spec = pl.BlockSpec((1, W), lambda c, i: (0, 0))

    if k > 1:
        # Absolute packed targets: sample j of a packed row lives in lanes
        # [j*C_pad, (j+1)*C_pad); its target lane is j*C_pad + t. Values < 128,
        # exact in f32 (needed for the MXU segment-broadcast).
        t_abs = (t.reshape(M_pad, k)
                 + jnp.arange(k, dtype=jnp.int32) * C_pad).astype(jnp.float32)
        lane_row = jnp.arange(W, dtype=jnp.float32).reshape(1, W)
        sel = (jnp.arange(W, dtype=jnp.int32)[None, :] // C_pad
               == jnp.arange(k, dtype=jnp.int32)[:, None]).astype(jnp.float32)
        operands = (x_pk, t_abs, a_neg_row, lane_row, sel)
        in_specs = [
            common_x_spec,
            pl.BlockSpec((tile_m, k), lambda c, i: (c * steps + i, 0)),
            const_row_spec,
            const_row_spec,
            pl.BlockSpec((k, W), lambda c, i: (0, 0)),
        ]
        kernel = functools.partial(_focal_kernel_packed, gamma=float(gamma))
    else:
        t_col = t.reshape(M_pad, 1)
        lane_row = jnp.arange(W, dtype=jnp.int32).reshape(1, W)
        operands = (x_pk, t_col, a_neg_row, lane_row)
        in_specs = [
            common_x_spec,
            pl.BlockSpec((tile_m, 1), lambda c, i: (c * steps + i, 0)),
            const_row_spec,
            const_row_spec,
        ]
        kernel = functools.partial(_focal_kernel_unpacked, gamma=float(gamma))

    partials = pl.pallas_call(
        kernel,
        out_shape=jax.ShapeDtypeStruct((num_cores * 8, W), jnp.float32),
        grid=(num_cores, steps),
        in_specs=in_specs,
        out_specs=pl.BlockSpec((8, W), lambda c, i: (c, 0)),
        scratch_shapes=[pltpu.VMEM((8, W), jnp.float32)],
        compiler_params=pltpu.CompilerParams(
            dimension_semantics=("parallel", "arbitrary"),
            vmem_limit_bytes=32 * 1024 * 1024),
        cost_estimate=pl.CostEstimate(
            flops=int(M_pad * W * (8 + 2 * k)),
            transcendentals=int(M_pad * W),
            bytes_accessed=int(M_pad * W * 4 + M_pad * k * 4
                               + 3 * W * 4 + num_cores * 8 * W * 4)),
    )(*operands)

    # Final cross-lane/sublane reduce happens once, on the tiny partials slab.
    total = jnp.sum(partials)
    return total / N if size_average else total


def focal_loss_ref(inputs, targets, alpha=None, gamma=2.0, size_average=True):
    """Pure-JAX reference mirroring the PyTorch forward exactly."""
    n, c = inputs.shape
    if alpha is None:
        alpha = jnp.ones((c,), jnp.float32)
    alpha = jnp.asarray(alpha, jnp.float32).reshape(-1)
    class_mask = jax.nn.one_hot(targets, c, dtype=jnp.float32)
    probs = jnp.sum(inputs * class_mask, axis=1, keepdims=True)
    a = alpha[targets].reshape(-1, 1)
    log_p = jnp.log(probs)
    batch_loss = -a * jnp.power(1.0 - probs, gamma) * log_p
    return jnp.mean(batch_loss) if size_average else jnp.sum(batch_loss)


if __name__ == "__main__":
    key = jax.random.PRNGKey(0)
    k1, k2, k3, k4, k5, k6 = jax.random.split(key, 6)

    # Test 1: C=10 -> class-padded packed path (C_pad=16, k=8), ragged N,
    # custom alpha, mean reduction, integer gamma.
    N1, C1 = 37, 10
    x1 = jax.nn.softmax(jax.random.normal(k1, (N1, C1), jnp.float32), axis=-1)
    t1 = jax.random.randint(k2, (N1,), 0, C1, dtype=jnp.int32)
    alpha1 = jnp.linspace(0.25, 1.0, C1, dtype=jnp.float32)
    out1 = jax.block_until_ready(
        focal_loss(x1, t1, alpha=alpha1, gamma=2.0, size_average=True))
    ref1 = focal_loss_ref(x1, t1, alpha=alpha1, gamma=2.0, size_average=True)
    assert jnp.allclose(out1, ref1, rtol=1e-5, atol=1e-5), (out1, ref1)

    # Test 2: C=16 -> native divisor packed path (k=8), default alpha,
    # sum reduction, gamma=3.
    N2, C2 = 32, 16
    x2 = jax.nn.softmax(jax.random.normal(k3, (N2, C2), jnp.float32), axis=-1)
    t2 = jax.random.randint(k4, (N2,), 0, C2, dtype=jnp.int32)
    out2 = jax.block_until_ready(
        focal_loss(x2, t2, gamma=3.0, size_average=False))
    ref2 = focal_loss_ref(x2, t2, gamma=3.0, size_average=False)
    assert jnp.allclose(out2, ref2, rtol=1e-5, atol=1e-5), (out2, ref2)

    # Test 3: C=130 > 128 -> unpacked path (C_pad=256, k=1), non-integer gamma.
    N3, C3 = 24, 130
    x3 = jax.nn.softmax(jax.random.normal(k5, (N3, C3), jnp.float32), axis=-1)
    t3 = jax.random.randint(k6, (N3,), 0, C3, dtype=jnp.int32)
    out3 = jax.block_until_ready(
        focal_loss(x3, t3, gamma=2.5, size_average=True))
    ref3 = focal_loss_ref(x3, t3, gamma=2.5, size_average=True)
    assert jnp.allclose(out3, ref3, rtol=1e-5, atol=1e-5), (out3, ref3)

    print("KERNEL_OK")
</pallas_src>

<mosaic_0001>
module attributes {stable_mosaic.version = 11 : i64} {
  func.func @_focal_kernel_packed(%arg0: i32, %arg1: i32, %arg2: memref<8x128xf32, #tpu.memory_space<vmem>>, %arg3: memref<8x8xf32, #tpu.memory_space<vmem>>, %arg4: memref<1x128xf32, #tpu.memory_space<vmem>>, %arg5: memref<1x128xf32, #tpu.memory_space<vmem>>, %arg6: memref<8x128xf32, #tpu.memory_space<vmem>>, %arg7: memref<8x128xf32, #tpu.memory_space<vmem>>, %arg8: memref<8x128xf32, #tpu.memory_space<vmem>>) attributes {dimension_semantics = [#tpu.dimension_semantics<parallel>, #tpu.dimension_semantics<arbitrary>], iteration_bounds = array<i64: 1, 1>, scalar_prefetch = 0 : i64, scratch_operands = 1 : i64, tpu.core_type = #tpu.core_type<tc>, window_params = [{transform_indices = @transform_0, window_bounds = array<i64: 8, 128>}, {transform_indices = @transform_1, window_bounds = array<i64: 8, 8>}, {pipeline_mode = #tpu.pipeline_mode<synchronous>, transform_indices = @transform_2, window_bounds = array<i64: 1, 128>}, {pipeline_mode = #tpu.pipeline_mode<synchronous>, transform_indices = @transform_3, window_bounds = array<i64: 1, 128>}, {pipeline_mode = #tpu.pipeline_mode<synchronous>, transform_indices = @transform_4, window_bounds = array<i64: 8, 128>}, {transform_indices = @transform_5, window_bounds = array<i64: 8, 128>}]} {
    %c0_i32 = arith.constant 0 : i32
    %0 = arith.cmpi eq, %arg1, %c0_i32 : i32
    %1 = arith.extui %0 : i1 to i32
    %c0_i32_0 = arith.constant 0 : i32
    %2 = arith.cmpi ne, %1, %c0_i32_0 : i32
    scf.if %2 {
      %cst_19 = arith.constant 0.000000e+00 : f32
      %28 = vector.broadcast %cst_19 : f32 to vector<8x128xf32>
      %c0_20 = arith.constant 0 : index
      %c0_21 = arith.constant 0 : index
      %29 = vector.load %arg8[%c0_20, %c0_21] : memref<8x128xf32, #tpu.memory_space<vmem>>, vector<8x128xf32>
      tpu.vector_store %arg8[%c0_20, %c0_21], %28 {strides = array<i32>} : memref<8x128xf32, #tpu.memory_space<vmem>>, vector<8x128xf32>,
    } else {
    }
    %c0 = arith.constant 0 : index
    %c0_1 = arith.constant 0 : index
    %3 = vector.load %arg3[%c0, %c0_1] : memref<8x8xf32, #tpu.memory_space<vmem>>, vector<8x8xf32>
    %c0_2 = arith.constant 0 : index
    %c0_3 = arith.constant 0 : index
    %4 = vector.load %arg6[%c0_2, %c0_3] : memref<8x128xf32, #tpu.memory_space<vmem>>, vector<8x128xf32>
    %cst = arith.constant dense<0.000000e+00> : vector<8x128xf32>
    %5 = tpu.matmul %3, %4, %cst {dimension_numbers = #tpu.dot_dimension_numbers<[1], [0], [0], [1], [0, 0, 1, 1], [], []>} : vector<8x8xf32>, vector<8x128xf32>, vector<8x128xf32> -> vector<8x128xf32>
    %c0_4 = arith.constant 0 : index
    %c0_5 = arith.constant 0 : index
    %6 = vector.load %arg5[%c0_4, %c0_5] : memref<1x128xf32, #tpu.memory_space<vmem>>, vector<1x128xf32>
    %7 = vector.broadcast %6 : vector<1x128xf32> to vector<8x128xf32>
    %8 = arith.cmpf oeq, %5, %7 : vector<8x128xf32>
    %c0_6 = arith.constant 0 : index
    %c0_7 = arith.constant 0 : index
    %9 = vector.load %arg2[%c0_6, %c0_7] : memref<8x128xf32, #tpu.memory_space<vmem>>, vector<8x128xf32>
    %c0_8 = arith.constant 0 : index
    %c0_9 = arith.constant 0 : index
    %10 = vector.load %arg4[%c0_8, %c0_9] : memref<1x128xf32, #tpu.memory_space<vmem>>, vector<1x128xf32>
    %cst_10 = arith.constant 1.000000e+00 : f32
    %11 = vector.broadcast %cst_10 : f32 to vector<8x128xf32>
    %12 = arith.subf %11, %9 : vector<8x128xf32>
    %13 = arith.mulf %12, %12 : vector<8x128xf32>
    %14 = vector.broadcast %10 : vector<1x128xf32> to vector<8x128xf32>
    %15 = arith.mulf %14, %13 : vector<8x128xf32>
    %16 = math.log %9 : vector<8x128xf32>
    %17 = arith.mulf %15, %16 : vector<8x128xf32>
    %cst_11 = arith.constant 0.000000e+00 : f32
    %18 = vector.broadcast %cst_11 : f32 to vector<8x128xf32>
    %19 = arith.select %8, %17, %18 : vector<8x128xi1>, vector<8x128xf32>
    %c0_12 = arith.constant 0 : index
    %c0_13 = arith.constant 0 : index
    %20 = vector.load %arg8[%c0_12, %c0_13] : memref<8x128xf32, #tpu.memory_space<vmem>>, vector<8x128xf32>
    %21 = vector.shape_cast %19 : vector<8x128xf32> to vector<1x8x128xf32>
    %cst_14 = arith.constant dense<0.000000e+00> : vector<8x128xf32>
    %22 = vector.multi_reduction <add>, %21, %cst_14 [0] : vector<1x8x128xf32> to vector<8x128xf32>
    %23 = arith.addf %20, %22 : vector<8x128xf32>
    %c0_15 = arith.constant 0 : index
    %c0_16 = arith.constant 0 : index
    %24 = vector.load %arg8[%c0_15, %c0_16] : memref<8x128xf32, #tpu.memory_space<vmem>>, vector<8x128xf32>
    tpu.vector_store %arg8[%c0_15, %c0_16], %23 {strides = array<i32>} : memref<8x128xf32, #tpu.memory_space<vmem>>, vector<8x128xf32>,
    %c0_i32_17 = arith.constant 0 : i32
    %25 = arith.cmpi eq, %arg1, %c0_i32_17 : i32
    %26 = arith.extui %25 : i1 to i32
    %c0_i32_18 = arith.constant 0 : i32
    %27 = arith.cmpi ne, %26, %c0_i32_18 : i32
    scf.if %27 {
      %c0_19 = arith.constant 0 : index
      %c0_20 = arith.constant 0 : index
      %28 = vector.load %arg8[%c0_19, %c0_20] : memref<8x128xf32, #tpu.memory_space<vmem>>, vector<8x128xf32>
      %c0_21 = arith.constant 0 : index
      %c0_22 = arith.constant 0 : index
      %29 = vector.load %arg7[%c0_21, %c0_22] : memref<8x128xf32, #tpu.memory_space<vmem>>, vector<8x128xf32>
      tpu.vector_store %arg7[%c0_21, %c0_22], %28 {strides = array<i32>} : memref<8x128xf32, #tpu.memory_space<vmem>>, vector<8x128xf32>,
    } else {
    }
    return
  }
  func.func @transform_0(%arg0: i32, %arg1: i32) -> (i32, i32) {
    %c1_i32 = arith.constant 1 : i32
    %0 = arith.muli %arg0, %c1_i32 : i32
    %1 = arith.addi %0, %arg1 : i32
    %c0_i32 = arith.constant 0 : i32
    %c0_i32_0 = arith.constant 0 : i32
    return %1, %c0_i32 : i32, i32
  }
  func.func @transform_1(%arg0: i32, %arg1: i32) -> (i32, i32) {
    %c1_i32 = arith.constant 1 : i32
    %0 = arith.muli %arg0, %c1_i32 : i32
    %1 = arith.addi %0, %arg1 : i32
    %c0_i32 = arith.constant 0 : i32
    %c0_i32_0 = arith.constant 0 : i32
    return %1, %c0_i32 : i32, i32
  }
  func.func @transform_2(%arg0: i32, %arg1: i32) -> (i32, i32) {
    %c0_i32 = arith.constant 0 : i32
    %c0_i32_0 = arith.constant 0 : i32
    %c0_i32_1 = arith.constant 0 : i32
    return %c0_i32, %c0_i32_0 : i32, i32
  }
  func.func @transform_3(%arg0: i32, %arg1: i32) -> (i32, i32) {
    %c0_i32 = arith.constant 0 : i32
    %c0_i32_0 = arith.constant 0 : i32
    %c0_i32_1 = arith.constant 0 : i32
    return %c0_i32, %c0_i32_0 : i32, i32
  }
  func.func @transform_4(%arg0: i32, %arg1: i32) -> (i32, i32) {
    %c0_i32 = arith.constant 0 : i32
    %c0_i32_0 = arith.constant 0 : i32
    %c0_i32_1 = arith.constant 0 : i32
    return %c0_i32, %c0_i32_0 : i32, i32
  }
  func.func @transform_5(%arg0: i32, %arg1: i32) -> (i32, i32) {
    %c0_i32 = arith.constant 0 : i32
    %c0_i32_0 = arith.constant 0 : i32
    return %arg0, %c0_i32 : i32, i32
  }
}

</mosaic_0001>

<bundles_post_ra>
// kernel: tpu_custom_call.1
= control target key start
LH: loop header
LB: loop body
LE: loop exit
PB: predicated region body
PF: predicated region fallthrough
CT: control target
= control target key end

     0   :  { %10 = vsyncpa [#allocation4], 0  ;;  %s351_s0 = inlined_call_operand.hbm [shape: f32[8,128], index: 0, kind: input, shape index: {}]   ;;  %s352_s1 = inlined_call_operand.hbm [shape: f32[8,8], index: 1, kind: input, shape index: {}]   ;;  %s353_s2 = inlined_call_operand.vmem [shape: f32[1,128], index: 2, kind: input, shape index: {}]   ;;  %s354_s3 = inlined_call_operand.vmem [shape: f32[1,128], index: 3, kind: input, shape index: {}]   ;;  %s355_s4 = inlined_call_operand.vmem [shape: f32[8,128], index: 4, kind: input, shape index: {}]   ;;  %s356_s5 = inlined_call_operand.hbm [shape: f32[8,128], index: 5, kind: output, shape index: {}]  }
   0x1   :  { %11 = vsyncpa [#allocation7], 0 }
   0x2   :  { %12 = vsyncpa [#allocation5], 0  ;;  %s271_s18 = smov [#allocation3]   ;;  %s272_s20 = smov [#allocation6]  }
   0x3   :  { %s22_s19 = sshll.u32 %s271_s18, 4  ;;  %s35_s21 = sshll.u32 %s272_s20, 4  ;;  %s23_s19 = int_to_ptr.vmem [resolvable:$true] %s22_s19  ;;  %s36_s21 = int_to_ptr.vmem [resolvable:$true] %s35_s21 }
   0x4   :  { %s199_s24 = scalar_lea.hbm %s351_s0, 128 }
   0x5   :  { %p200_p0 = scmp.ne.s32.totalorder %s351_s0, %s199_s24  ;;  %p203_p1 = scmp.lt.u32.totalorder %s199_s24, %s351_s0 }
   0x7   :  { %p205_p2 = pnand %p203_p1, %p200_p0 }
   0x9   :  { %208 = shalt.err (!%p205_p2)
}
   0xa   :  { %s209_s29 = scalar_lea.vmem %s23_s19, 128  ;;  %p214_p4 = scmp.lt.s32.totalorder %s23_s19, %s23_s19 }
   0xb   :  { %p210_p3 = scmp.ne.s32.totalorder %s23_s19, %s209_s29  ;;  %p215_p5 = scmp.lt.s32.totalorder %s209_s29, %s209_s29 }
   0xd   :  { %p216_p6 = por %p215_p5, %p214_p4 }
   0xf   :  { %p217_p7 = pnand %p216_p6, %p210_p3 }
  0x11   :  { %220 = shalt.err (!%p217_p7)
}
  0x12   :  { %25 = dma.hbm_to_vmem [thread:$0]  %s351_s0, 128, %s23_s19, [#allocation4]  }
  0x13   :  { %s221_s9 = scalar_lea.hbm %s352_s1, 128 }
  0x14   :  { %p222_p8 = scmp.ne.s32.totalorder %s352_s1, %s221_s9  ;;  %p225_p9 = scmp.lt.u32.totalorder %s221_s9, %s352_s1 }
  0x16   :  { %p227_p10 = pnand %p225_p9, %p222_p8 }
  0x18   :  { %230 = shalt.err (!%p227_p10)
}
  0x19   :  { %s231_s14 = scalar_lea.vmem %s36_s21, 128  ;;  %p236_p12 = scmp.lt.s32.totalorder %s36_s21, %s36_s21 }
  0x1a   :  { %p232_p11 = scmp.ne.s32.totalorder %s36_s21, %s231_s14  ;;  %p237_p13 = scmp.lt.s32.totalorder %s231_s14, %s231_s14 }
  0x1c   :  { %p238_p0 = por %p237_p13, %p236_p12 }
  0x1e   :  { %p239_p1 = pnand %p238_p0, %p232_p11 }
  0x20   :  { %242 = shalt.err (!%p239_p1)
}
  0x21   :  { %38 = dma.hbm_to_vmem [thread:$0]  %s352_s1, 128, %s36_s21, [#allocation7]  }
  0x22   :  { %265 = dma.done.wait [#allocation4], 128  }
  0x23   :  { %266 = vsyncadd [#allocation4], 4294967168 }
  0x24   :  { %267 = dma.done.wait [#allocation7], 128  }
  0x25   :  { %268 = vsyncadd [#allocation7], 4294967168  ;;  %v273_v0 = vmov 0.0   ;;  %vm274_vm0 = vmmov 0   ;;  %vm60_vm1 = vcmask 64512   ;;  %v59_v1 = vld [vmem:[%s355_s4] sm:$0xff] }
  0x26   :  { %187 = vmatprep.subr.mxu0 %v273_v0  ;;  %189 = vmatprep.mubr.msk.f32.mxu0 %vm274_vm0, %v273_v0  ;;  %v58_v2 = vld [vmem:[#allocation6] sm:$0xff]  ;;  %v142_v3 = vld [vmem:[#allocation3] sm:$0xff]  ;;  %s275_s4 = smov [#allocation8]  }
  0x27   :  { %188 = vmatpush3.msra.mxu0 %v59_v1  ;;  %197 = vlog2.f32 %v142_v3  ;;  %v144_v4 = vsub.f32 1.0, %v142_v3  ;;  %v184_v7 = vld [vmem:[%s353_s2] ss:$0 sm:$0xff]  ;;  %s172_s21 = sshll.u32 %s275_s4, 4  ;;  %s173_s21 = int_to_ptr.vmem [resolvable:$true] %s172_s21 }
  0x28   :  { %190 = vmatmul.mubr.msk.f32.vlgmr.msra.gmra.mrb[0].mxu0 %vm60_vm1, %v58_v2  ;;  %v183_v10 = vld [vmem:[%s354_s3] ss:$0 sm:$0xff]  ;;  %s243_s22 = scalar_lea.vmem %s173_s21, 128  ;;  %p248_p3 = scmp.lt.s32.totalorder %s173_s21, %s173_s21 }
  0x29   :  { %v145_v5 = vmul.f32 %v144_v4, %v144_v4  ;;  %p244_p2 = scmp.ne.s32.totalorder %s173_s21, %s243_s22  ;;  %p249_p4 = scmp.lt.s32.totalorder %s243_s22, %s243_s22 }
  0x2b   :  { %v152_v8 = vmul.f32 %v184_v7, %v145_v5  ;;  %p250_p5 = por %p249_p4, %p248_p3 }
  0x2d   :  { %p251_p6 = pnand %p250_p5, %p244_p2 }
  0x31   :  { %v198_v6 = vpop.eup %197 }
  0x32   :  { %v154_v9 = vmul.f32 0.6931472, %v198_v6 }
  0x34   :  { %v155_v11 = vmul.f32 %v154_v9, %v152_v8 }
  0xfb   :  { %v130_v12 = vpop.f32.mrb[0].mxu0 }
  0xfc   :  { %vm141_vm2 = vcmp.eq.f32.partialorder %v130_v12, %v183_v10  ;;  %v191_v13 = vpop.f32.mrb[1].mxu0 }
  0xfd   :  { %v156_v14 = vsel %vm141_vm2, %v155_v11, 0.0 }
  0xfe   :  { %165 = vst [vmem:[#allocation8] sm:$0xff] %v156_v14 }
  0xff   :  { %254 = shalt.err (!%p251_p6)
}
 0x100   :  { %s255_s3 = scalar_lea.hbm %s356_s5, 128 }
 0x101   :  { %p256_p7 = scmp.ne.s32.totalorder %s356_s5, %s255_s3  ;;  %p259_p8 = scmp.lt.u32.totalorder %s255_s3, %s356_s5 }
 0x103   :  { %p261_p9 = pnand %p259_p8, %p256_p7 }
 0x105   :  { %264 = shalt.err (!%p261_p9)
}
 0x106   :  { %175 = dma.vmem_to_hbm [thread:$0]  %s173_s21, 128, %s356_s5, [#allocation5]  }
 0x107   :  { %269 = dma.done.wait [#allocation5], 128  }
 0x108   :  { %270 = vsyncadd [#allocation5], 4294967168 }
 0x109   :  { %179 = vsyncpa [#allocation4], 1 }
 0x10a   :  { %180 = vsyncpa [#allocation7], 1 }
 0x10b   :  { %181 = vsyncpa [#allocation5], 1 }

</bundles_post_ra>
